<compile_context>
chip_gen: v7x
topology: tpu7x:2x2x1
jax: 0.10.0
libtpu: 0.0.40
codegen_flags: <defaults>
</compile_context>

<pallas_src>
import functools
from math import sqrt

import jax
import jax.numpy as jnp
from jax import lax
from jax.experimental import pallas as pl
from jax.experimental.pallas import tpu as pltpu


def _round_up(x, m):
    return (x + m - 1) // m * m


def _vmem_budgets():
    """Returns (row-tile VMEM budget, vmem_limit_bytes), generation-aware."""
    try:
        cap = getattr(pltpu.get_tpu_info(), "vmem_capacity_bytes", 64 << 20)
    except Exception:  # pragma: no cover - be conservative if query fails
        cap = 64 << 20
    if cap >= (96 << 20):           # v5e / v6e: 128 MiB physical VMEM
        return 24 << 20, 96 << 20
    return 12 << 20, 48 << 20       # v7x: 64 MiB physical VMEM


# ------------------------------ Linear kernel -------------------------------

def _linear_kernel(x_ref, w_ref, b_ref, o_ref, acc_ref):
    # y = x @ W + b   (W stored as (in, out), equivalent to torch W.T)
    @pl.when(pl.program_id(2) == 0)
    def _():
        acc_ref[...] = jnp.zeros_like(acc_ref)

    acc_ref[...] += jnp.dot(x_ref[...], w_ref[...],
                            preferred_element_type=jnp.float32)

    @pl.when(pl.program_id(2) == pl.num_programs(2) - 1)
    def _():
        o_ref[...] = (acc_ref[...]
                      + b_ref[...].astype(jnp.float32)).astype(o_ref.dtype)


def _choose_row_tile(m, tk, tn, itemsize, budget):
    # Subtract the (double-buffered) resident weight + bias blocks from the
    # budget, then size the double-buffered activation/output row tiles plus
    # the f32 accumulator.
    resident = 2 * (tk * tn + tn) * itemsize
    avail = max(budget - resident, 2 << 20)
    per_row = 2 * (tk + tn) * itemsize + tn * 4
    tm = max(8, min(1024, avail // per_row))
    tm = (tm // 8) * 8
    return max(8, min(tm, _round_up(m, 8)))


def pallas_linear(x2d, w, b, out_dtype=None):
    """x2d: (M, Din), w: (Din, Dout), b: (Dout,) -> (M, Dout)."""
    M, Din = x2d.shape
    Dout = w.shape[1]
    out_dtype = out_dtype or x2d.dtype
    itemsize = jnp.dtype(x2d.dtype).itemsize
    budget, vmem_limit = _vmem_budgets()

    # Tile K / Dout only when the full weight block would blow VMEM; a full
    # dim is always a legal block extent, a partial one must be 128-aligned.
    tk = Din if Din <= 1024 else 512
    tn = Dout if Dout <= 1024 else 512
    din_p = _round_up(Din, tk)
    dout_p = _round_up(Dout, tn)
    tm = _choose_row_tile(M, tk, tn, itemsize, budget)
    m_p = _round_up(M, tm)

    x_p = x2d
    if (m_p, din_p) != (M, Din):
        x_p = jnp.pad(x2d, ((0, m_p - M), (0, din_p - Din)))
    w_p = w if (din_p, dout_p) == (Din, Dout) else jnp.pad(
        w, ((0, din_p - Din), (0, dout_p - Dout)))
    b_p = b if dout_p == Dout else jnp.pad(b, ((0, dout_p - Dout),))

    cost = pl.CostEstimate(
        flops=int(2 * M * Din * Dout),
        transcendentals=0,
        bytes_accessed=int((M * Din + Din * Dout + Dout + M * Dout) * itemsize))

    out = pl.pallas_call(
        _linear_kernel,
        out_shape=jax.ShapeDtypeStruct((m_p, dout_p), out_dtype),
        grid=(m_p // tm, dout_p // tn, din_p // tk),
        in_specs=[
            pl.BlockSpec((tm, tk), lambda i, j, k: (i, k)),
            pl.BlockSpec((tk, tn), lambda i, j, k: (k, j)),
            pl.BlockSpec((1, tn), lambda i, j, k: (0, j)),
        ],
        out_specs=pl.BlockSpec((tm, tn), lambda i, j, k: (i, j)),
        scratch_shapes=[pltpu.VMEM((tm, tn), jnp.float32)],
        compiler_params=pltpu.CompilerParams(
            dimension_semantics=("parallel", "parallel", "arbitrary"),
            vmem_limit_bytes=vmem_limit),
        cost_estimate=cost,
    )(x_p, w_p, b_p.reshape(1, dout_p))

    if (m_p, dout_p) != (M, Dout):
        out = out[:M, :Dout]
    return out


# -------------------- Fused attention + output projection -------------------

def _attn_out_kernel(q_ref, k_ref, v_ref, wo_ref, bo_ref, o_ref, *, scale):
    # Per grid step: one (batch, node).
    # q_ref: (1, H, L, dk), k_ref: (1, H, S, dk), v_ref: (1, H, S, dv)
    # wo_ref: (H, dv, d_model), bo_ref: (1, d_model), o_ref: (1, L, d_model)
    q = q_ref[0]
    k = k_ref[0]
    v = v_ref[0]

    # Head-batched QK^T: contract dk, batch H.  No transposes, no per-head
    # lane slices -- one MXU push for all heads of this node.
    s = lax.dot_general(q, k, (((2,), (2,)), ((0,), (0,))),
                        preferred_element_type=jnp.float32) * scale  # (H,L,S)
    s = s - jnp.max(s, axis=-1, keepdims=True)
    p = jnp.exp(s)
    l = jnp.sum(p, axis=-1, keepdims=True)
    # EUP approximate reciprocal + one Newton step (~f32-accurate softmax
    # denominator; use an exact divide if full f32 accuracy is required).
    inv = pl.reciprocal(l, approx=True)
    inv = inv * (2.0 - l * inv)
    p = (p * inv).astype(v.dtype)

    ctx = lax.dot_general(p, v, (((2,), (1,)), ((0,), (0,))),
                          preferred_element_type=jnp.float32)        # (H,L,dv)

    # Fused output projection: contract (H, dv) against wo viewed as
    # (H, dv, d_model) via a head-batched dot + a cheap cross-vreg sum over H
    # (no jnp.concatenate / lane shuffles).
    part = lax.dot_general(ctx.astype(wo_ref.dtype), wo_ref[...],
                           (((2,), (1,)), ((0,), (0,))),
                           preferred_element_type=jnp.float32)       # (H,L,dm)
    out = jnp.sum(part, axis=0) + bo_ref[...].astype(jnp.float32)    # (L, dm)
    o_ref[0] = out.astype(o_ref.dtype)


def pallas_attention_outproj(q, k, v, wo, bo, out_dtype):
    """q: (B*N, H, L, dk), k: (B*N, H, S, dk), v: (B*N, H, S, dv),
    wo: (H*dv, d_model), bo: (d_model,) -> (B*N, L, d_model)."""
    BN, H, L, dk = q.shape
    _, _, S, dv = v.shape
    d_model = wo.shape[1]
    scale = 1.0 / sqrt(dk)
    itemsize = jnp.dtype(q.dtype).itemsize
    _, vmem_limit = _vmem_budgets()

    wo_r = wo.reshape(H, dv, d_model)
    kernel = functools.partial(_attn_out_kernel, scale=scale)

    flops = BN * H * (2 * L * S * dk + 2 * L * S * dv + 2 * L * dv * d_model)
    cost = pl.CostEstimate(
        flops=int(flops),
        transcendentals=int(BN * H * L * S),
        bytes_accessed=int((q.size + k.size + v.size) * itemsize
                           + (wo.size + bo.size) * jnp.dtype(wo.dtype).itemsize
                           + BN * L * d_model * jnp.dtype(out_dtype).itemsize))

    return pl.pallas_call(
        kernel,
        out_shape=jax.ShapeDtypeStruct((BN, L, d_model), out_dtype),
        grid=(BN,),
        in_specs=[
            pl.BlockSpec((1, H, L, dk), lambda i: (i, 0, 0, 0)),
            pl.BlockSpec((1, H, S, dk), lambda i: (i, 0, 0, 0)),
            pl.BlockSpec((1, H, S, dv), lambda i: (i, 0, 0, 0)),
            pl.BlockSpec((H, dv, d_model), lambda i: (0, 0, 0)),  # resident wo
            pl.BlockSpec((1, d_model), lambda i: (0, 0)),         # resident bo
        ],
        out_specs=pl.BlockSpec((1, L, d_model), lambda i: (i, 0, 0)),
        compiler_params=pltpu.CompilerParams(
            dimension_semantics=("parallel",),   # B*N steps shard across cores
            vmem_limit_bytes=vmem_limit),
        cost_estimate=cost,
    )(q, k, v, wo_r, bo.reshape(1, d_model))


# ------------------------------ Module wrapper -------------------------------

def st_attention_t2s_forward(params, queries, keys, values,
                             attn_mask=None, query_lengths=None,
                             key_lengths=None, support=None,
                             matmul_dtype=None):
    """Mirrors STAttentionT2SLayer.forward.

    queries: (B, L, N, d_model), keys/values: (B, S, N, d_model).
    matmul_dtype: optional (e.g. jnp.bfloat16) dtype for MXU operands of the
    q/k/v slabs and all attention matmuls; accumulation stays f32.
    """
    # TODO(synk): attn_mask / query_lengths / key_lengths are accepted but the
    # chosen inner_attention (full unmasked softmax attention) ignores them.
    B, L, N1, d_model = queries.shape
    _, S, N2, _ = keys.shape
    if N1 != N2:
        raise ValueError(f"node-count mismatch: queries N={N1}, keys N={N2}")
    H = params["n_heads"]
    Hdk = params["wq"].shape[1]
    Hdv = params["wv"].shape[1]
    dk, dv = Hdk // H, Hdv // H
    proj_dtype = matmul_dtype or queries.dtype

    wq, wk, wv, wo = params["wq"], params["wk"], params["wv"], params["wo"]
    if matmul_dtype is not None:
        wq, wk, wv, wo = (w.astype(matmul_dtype) for w in (wq, wk, wv, wo))

    # Projections: (M, N, K)-gridded Pallas matmuls on the flattened row slab.
    q = pallas_linear(queries.reshape(B * L * N1, d_model), wq, params["bq"],
                      out_dtype=proj_dtype)
    if keys is values:
        # Self-attention fast path: stream the shared slab from HBM once.
        wkv = jnp.concatenate([wk, wv], axis=1)
        bkv = jnp.concatenate([params["bk"], params["bv"]], axis=0)
        kv = pallas_linear(keys.reshape(B * S * N2, d_model), wkv, bkv,
                           out_dtype=proj_dtype)
        k_proj, v_proj = kv[:, :Hdk], kv[:, Hdk:]
    else:
        k_proj = pallas_linear(keys.reshape(B * S * N2, d_model), wk,
                               params["bk"], out_dtype=proj_dtype)
        v_proj = pallas_linear(values.reshape(B * S * N2, d_model), wv,
                               params["bv"], out_dtype=proj_dtype)

    # One XLA relayout per tensor: (B*T*N, H*d) -> (B*N, H, T, d).  The node
    # and head structure then lives on the pallas grid / batched dot_general
    # instead of python-unrolled, sublane-strided slices inside the kernel.
    def to_node_head_major(x2d, T, d):
        x = x2d.reshape(B, T, N1, H, d)
        x = jnp.transpose(x, (0, 2, 3, 1, 4))
        return x.reshape(B * N1, H, T, d)

    qh = to_node_head_major(q, L, dk)
    kh = to_node_head_major(k_proj, S, dk)
    vh = to_node_head_major(v_proj, S, dv)

    out = pallas_attention_outproj(qh, kh, vh, wo, params["bo"],
                                   out_dtype=queries.dtype)
    # (B*N, L, d_model) -> (B, L, N, d_model): one XLA transpose at the end.
    return jnp.transpose(out.reshape(B, N1, L, d_model), (0, 2, 1, 3))


# ------------------------------ Reference (jnp) ------------------------------

def reference_forward(params, queries, keys, values):
    B, L, N1, d_model = queries.shape
    _, S, N2, _ = keys.shape
    H = params["n_heads"]
    dk = params["wq"].shape[1] // H
    dv = params["wv"].shape[1] // H

    q = (queries @ params["wq"] + params["bq"]).reshape(B, L, N1, H, dk)
    k = (keys @ params["wk"] + params["bk"]).reshape(B, S, N2, H, dk)
    v = (values @ params["wv"] + params["bv"]).reshape(B, S, N2, H, dv)
    q = jnp.transpose(q, (0, 2, 1, 3, 4))   # (B, N, L, H, dk)
    k = jnp.transpose(k, (0, 2, 1, 3, 4))
    v = jnp.transpose(v, (0, 2, 1, 3, 4))

    scores = jnp.einsum("bnlhe,bnshe->bnhls", q, k) / sqrt(dk)
    attn = jax.nn.softmax(scores, axis=-1)
    o = jnp.einsum("bnhls,bnshd->bnlhd", attn, v).reshape(B, N1, L, H * dv)
    o = jnp.transpose(o, (0, 2, 1, 3))
    return o @ params["wo"] + params["bo"]


# ---------------------------------- Main -------------------------------------

if __name__ == "__main__":
    B, L, S, N, d_model, H = 2, 8, 8, 4, 32, 4
    dk = dv = d_model // H

    key = jax.random.PRNGKey(0)
    ks = jax.random.split(key, 16)

    def init_w(k, shape):
        return jax.random.normal(k, shape, jnp.float32) * 0.1

    params = {
        "n_heads": H,
        "wq": init_w(ks[0], (d_model, H * dk)), "bq": init_w(ks[1], (H * dk,)),
        "wk": init_w(ks[2], (d_model, H * dk)), "bk": init_w(ks[3], (H * dk,)),
        "wv": init_w(ks[4], (d_model, H * dv)), "bv": init_w(ks[5], (H * dv,)),
        "wo": init_w(ks[6], (H * dv, d_model)), "bo": init_w(ks[7], (d_model,)),
    }

    queries = jax.random.normal(ks[8], (B, L, N, d_model), jnp.float32)
    keys_in = jax.random.normal(ks[9], (B, S, N, d_model), jnp.float32)
    values_in = jax.random.normal(ks[10], (B, S, N, d_model), jnp.float32)

    out = st_attention_t2s_forward(params, queries, keys_in, values_in,
                                   attn_mask=None, query_lengths=None,
                                   key_lengths=None)
    out = jax.block_until_ready(out)

    ref = reference_forward(params, queries, keys_in, values_in)
    assert out.shape == (B, L, N, d_model)
    assert jnp.allclose(out, ref, rtol=1e-3, atol=1e-3), "mismatch vs reference"

    print("KERNEL_OK")
</pallas_src>

<mosaic_0001>
module attributes {stable_mosaic.version = 11 : i64} {
  func.func @_linear_kernel(%arg0: i32, %arg1: i32, %arg2: i32, %arg3: memref<64x32xf32, #tpu.memory_space<vmem>>, %arg4: memref<32x32xf32, #tpu.memory_space<vmem>>, %arg5: memref<1x32xf32, #tpu.memory_space<vmem>>, %arg6: memref<64x32xf32, #tpu.memory_space<vmem>>, %arg7: memref<64x32xf32, #tpu.memory_space<vmem>>) attributes {dimension_semantics = [#tpu.dimension_semantics<parallel>, #tpu.dimension_semantics<parallel>, #tpu.dimension_semantics<arbitrary>], iteration_bounds = array<i64: 1, 1, 1>, scalar_prefetch = 0 : i64, scratch_operands = 1 : i64, tpu.core_type = #tpu.core_type<tc>, window_params = [{transform_indices = @transform_0, window_bounds = array<i64: 64, 32>}, {transform_indices = @transform_1, window_bounds = array<i64: 32, 32>}, {transform_indices = @transform_2, window_bounds = array<i64: 1, 32>}, {transform_indices = @transform_3, window_bounds = array<i64: 64, 32>}]} {
    %c0_i32 = arith.constant 0 : i32
    %0 = arith.cmpi eq, %arg2, %c0_i32 : i32
    %1 = arith.extui %0 : i1 to i32
    %c0_i32_0 = arith.constant 0 : i32
    %2 = arith.cmpi ne, %1, %c0_i32_0 : i32
    scf.if %2 {
      %cst_10 = arith.constant 0.000000e+00 : f32
      %12 = vector.broadcast %cst_10 : f32 to vector<64x32xf32>
      %c0_11 = arith.constant 0 : index
      %c0_12 = arith.constant 0 : index
      %13 = vector.load %arg7[%c0_11, %c0_12] : memref<64x32xf32, #tpu.memory_space<vmem>>, vector<64x32xf32>
      tpu.vector_store %arg7[%c0_11, %c0_12], %12 {strides = array<i32>} : memref<64x32xf32, #tpu.memory_space<vmem>>, vector<64x32xf32>,
    } else {
    }
    %c0 = arith.constant 0 : index
    %c0_1 = arith.constant 0 : index
    %3 = vector.load %arg7[%c0, %c0_1] : memref<64x32xf32, #tpu.memory_space<vmem>>, vector<64x32xf32>
    %c0_2 = arith.constant 0 : index
    %c0_3 = arith.constant 0 : index
    %4 = vector.load %arg3[%c0_2, %c0_3] : memref<64x32xf32, #tpu.memory_space<vmem>>, vector<64x32xf32>
    %c0_4 = arith.constant 0 : index
    %c0_5 = arith.constant 0 : index
    %5 = vector.load %arg4[%c0_4, %c0_5] : memref<32x32xf32, #tpu.memory_space<vmem>>, vector<32x32xf32>
    %cst = arith.constant dense<0.000000e+00> : vector<64x32xf32>
    %6 = tpu.matmul %4, %5, %cst {dimension_numbers = #tpu.dot_dimension_numbers<[1], [0], [0], [1], [0, 0, 1, 1], [], []>} : vector<64x32xf32>, vector<32x32xf32>, vector<64x32xf32> -> vector<64x32xf32>
    %7 = arith.addf %3, %6 : vector<64x32xf32>
    %c0_6 = arith.constant 0 : index
    %c0_7 = arith.constant 0 : index
    %8 = vector.load %arg7[%c0_6, %c0_7] : memref<64x32xf32, #tpu.memory_space<vmem>>, vector<64x32xf32>
    tpu.vector_store %arg7[%c0_6, %c0_7], %7 {strides = array<i32>} : memref<64x32xf32, #tpu.memory_space<vmem>>, vector<64x32xf32>,
    %c0_i32_8 = arith.constant 0 : i32
    %9 = arith.cmpi eq, %arg2, %c0_i32_8 : i32
    %10 = arith.extui %9 : i1 to i32
    %c0_i32_9 = arith.constant 0 : i32
    %11 = arith.cmpi ne, %10, %c0_i32_9 : i32
    scf.if %11 {
      %c0_10 = arith.constant 0 : index
      %c0_11 = arith.constant 0 : index
      %12 = vector.load %arg7[%c0_10, %c0_11] : memref<64x32xf32, #tpu.memory_space<vmem>>, vector<64x32xf32>
      %c0_12 = arith.constant 0 : index
      %c0_13 = arith.constant 0 : index
      %13 = vector.load %arg5[%c0_12, %c0_13] : memref<1x32xf32, #tpu.memory_space<vmem>>, vector<1x32xf32>
      %14 = vector.broadcast %13 : vector<1x32xf32> to vector<64x32xf32>
      %15 = arith.addf %12, %14 : vector<64x32xf32>
      %c0_14 = arith.constant 0 : index
      %c0_15 = arith.constant 0 : index
      %16 = vector.load %arg6[%c0_14, %c0_15] : memref<64x32xf32, #tpu.memory_space<vmem>>, vector<64x32xf32>
      tpu.vector_store %arg6[%c0_14, %c0_15], %15 {strides = array<i32>} : memref<64x32xf32, #tpu.memory_space<vmem>>, vector<64x32xf32>,
    } else {
    }
    return
  }
  func.func @transform_0(%arg0: i32, %arg1: i32, %arg2: i32) -> (i32, i32) {
    %c0_i32 = arith.constant 0 : i32
    return %arg0, %arg2 : i32, i32
  }
  func.func @transform_1(%arg0: i32, %arg1: i32, %arg2: i32) -> (i32, i32) {
    %c0_i32 = arith.constant 0 : i32
    return %arg2, %arg1 : i32, i32
  }
  func.func @transform_2(%arg0: i32, %arg1: i32, %arg2: i32) -> (i32, i32) {
    %c0_i32 = arith.constant 0 : i32
    %c0_i32_0 = arith.constant 0 : i32
    return %c0_i32, %arg1 : i32, i32
  }
  func.func @transform_3(%arg0: i32, %arg1: i32, %arg2: i32) -> (i32, i32) {
    %c0_i32 = arith.constant 0 : i32
    return %arg0, %arg1 : i32, i32
  }
}

</mosaic_0001>

<bundles_post_ra>
// kernel: tpu_custom_call.1
= control target key start
LH: loop header
LB: loop body
LE: loop exit
PB: predicated region body
PF: predicated region fallthrough
CT: control target
= control target key end

     0   :  { %vm18_vm0 = vcmask 261120   ;;  %v285_v3 = vmov 0.0   ;;  %s401_s1 = inlined_call_operand.vmem [shape: f32[32,32], index: 1, kind: input, shape index: {}]   ;;  %s402_s0 = inlined_call_operand.vmem [shape: f32[64,32], index: 0, kind: input, shape index: {}]   ;;  %s403_s2 = inlined_call_operand.vmem [shape: f32[1,32], index: 2, kind: input, shape index: {}]   ;;  %s404_s3 = inlined_call_operand.vmem [shape: f32[64,32], index: 3, kind: output, shape index: {}]  }
   0x1   :  { %v43_v0 = vld [vmem:[%s401_s1] sm:$0xff]  ;;  %v44_v1 = vld [vmem:[%s401_s1 + $0x8] sm:$0xff]  ;;  %v45_v2 = vld [vmem:[%s401_s1 + $0x10] sm:$0xff]  ;;  %20 = vst.msk [vmem:[#allocation2 + $0x8] sm:$0xff] %vm18_vm0, %v285_v3 }
   0x2   :  { %19 = vst.msk [vmem:[#allocation2] sm:$0xff] %vm18_vm0, %v285_v3  ;;  %21 = vst.msk [vmem:[#allocation2 + $0x10] sm:$0xff] %vm18_vm0, %v285_v3  ;;  %v272_v4 = vpack.c.bf16 %v44_v1, %v43_v0  ;;  %v46_v5 = vld [vmem:[%s401_s1 + $0x18] sm:$0xff]  ;;  %v35_v6 = vld [vmem:[%s402_s0] sm:$0xff] }
   0x3   :  { %22 = vst.msk [vmem:[#allocation2 + $0x18] sm:$0xff] %vm18_vm0, %v285_v3  ;;  %23 = vst.msk [vmem:[#allocation2 + $0x20] sm:$0xff] %vm18_vm0, %v285_v3  ;;  %v39_v7 = vld [vmem:[%s402_s0 + $0x20] sm:$0xff]  ;;  %v276_v8 = vpack.c.bf16 %v46_v5, %v45_v2  ;;  %260 = vmatprep.mubr.msk.f32.mxu0 %vm18_vm0, %v35_v6  ;;  %v36_v9 = vld [vmem:[%s402_s0 + $0x8] sm:$0xff] }
   0x4   :  { %24 = vst.msk [vmem:[#allocation2 + $0x28] sm:$0xff] %vm18_vm0, %v285_v3  ;;  %25 = vst.msk [vmem:[#allocation2 + $0x30] sm:$0xff] %vm18_vm0, %v285_v3  ;;  %266 = vmatprep.mubr.msk.f32.mxu1 %vm18_vm0, %v39_v7  ;;  %273 = vmatprep.subr.bf16.mxu0 %v272_v4  ;;  %v40_v10 = vld [vmem:[%s402_s0 + $0x28] sm:$0xff]  ;;  %v37_v11 = vld [vmem:[%s402_s0 + $0x10] sm:$0xff] }
   0x5   :  { %26 = vst.msk [vmem:[#allocation2 + $0x38] sm:$0xff] %vm18_vm0, %v285_v3  ;;  %280 = vmatprep.subr.bf16.mxu1 %v272_v4  ;;  %275 = vmatpush3.bf16.msra.mxu0 %v272_v4  ;;  %v41_v12 = vld [vmem:[%s402_s0 + $0x30] sm:$0xff]  ;;  %v38_v13 = vld [vmem:[%s402_s0 + $0x18] sm:$0xff]  ;;  %v239_v39 = vld [vmem:[%s403_s2] ss:$0 sm:$0xff] }
   0x6   :  { %282 = vmatpush3.bf16.msra.mxu1 %v272_v4  ;;  %277 = vmatprep.subr.bf16.mxu0 %v276_v8  ;;  %v42_v14 = vld [vmem:[%s402_s0 + $0x38] sm:$0xff] }
   0x7   :  { %281 = vmatprep.subr.bf16.mxu1 %v276_v8 }
   0x8   :  { %v28_v15 = vld [vmem:[#allocation2 + $0x8] sm:$0xff] }
   0x9   :  { %279 = vmatpush3.bf16.msra.mxu0 %v276_v8  ;;  %v27_v17 = vld [vmem:[#allocation2] sm:$0xff]  ;;  %v29_v29 = vld [vmem:[#allocation2 + $0x10] sm:$0xff] }
   0xa   :  { %283 = vmatpush3.bf16.msra.mxu1 %v276_v8  ;;  %v31_v18 = vld [vmem:[#allocation2 + $0x20] sm:$0xff]  ;;  %v30_v27 = vld [vmem:[#allocation2 + $0x18] sm:$0xff] }
   0xb   :  { %v32_v16 = vld [vmem:[#allocation2 + $0x28] sm:$0xff]  ;;  %v33_v30 = vld [vmem:[#allocation2 + $0x30] sm:$0xff] }
   0xc   :  { %261 = vmatmul.mubr.msk.f32.vlgmr.msra.gmra.mrb[0].mxu0 %vm18_vm0, %v36_v9  ;;  %v34_v28 = vld [vmem:[#allocation2 + $0x38] sm:$0xff] }
   0xd   :  { %267 = vmatmul.mubr.msk.f32.vlgmr.msra.gmra.mrb[0].mxu1 %vm18_vm0, %v40_v10  ;;  %263 = vmatprep.mubr.msk.f32.mxu0 %vm18_vm0, %v37_v11 }
   0xe   :  { %269 = vmatprep.mubr.msk.f32.mxu1 %vm18_vm0, %v41_v12 }
  0x10   :  { %264 = vmatmul.mubr.msk.f32.gmra.mrb[2].mxu0 %vm18_vm0, %v38_v13 }
  0x11   :  { %270 = vmatmul.mubr.msk.f32.gmra.mrb[2].mxu1 %vm18_vm0, %v42_v14 }
  0xdf   :  { %v262_v19 = vpop.f32.mrb[0].mxu0 }
  0xe0   :  { %v268_v20 = vpop.f32.mrb[0].mxu1  ;;  %v178_v21 = vadd.f32 %v262_v19, %v28_v15  ;;  %v138_v23 = vpop.f32.mrb[1].mxu0 }
  0xe1   :  { %v182_v22 = vadd.f32 %v268_v20, %v32_v16  ;;  %v158_v24 = vpop.f32.mrb[1].mxu1  ;;  %v177_v25 = vadd.f32 %v138_v23, %v27_v17 }
  0xe2   :  { %v181_v26 = vadd.f32 %v158_v24, %v31_v18  ;;  %186 = vst.msk [vmem:[#allocation2 + $0x8] sm:$0xff] %vm18_vm0, %v178_v21 }
  0xe3   :  { %190 = vst.msk [vmem:[#allocation2 + $0x28] sm:$0xff] %vm18_vm0, %v182_v22  ;;  %185 = vst.msk [vmem:[#allocation2] sm:$0xff] %vm18_vm0, %v177_v25  ;;  %v265_v31 = vpop.f32.mrb[2].mxu0 }
  0xe4   :  { %189 = vst.msk [vmem:[#allocation2 + $0x20] sm:$0xff] %vm18_vm0, %v181_v26  ;;  %v271_v32 = vpop.f32.mrb[2].mxu1  ;;  %v180_v33 = vadd.f32 %v265_v31, %v30_v27  ;;  %v148_v35 = vpop.f32.mrb[3].mxu0 }
  0xe5   :  { %v184_v34 = vadd.f32 %v271_v32, %v34_v28  ;;  %v168_v36 = vpop.f32.mrb[3].mxu1  ;;  %v179_v37 = vadd.f32 %v148_v35, %v29_v29 }
  0xe6   :  { %v183_v38 = vadd.f32 %v168_v36, %v33_v30  ;;  %188 = vst.msk [vmem:[#allocation2 + $0x18] sm:$0xff] %vm18_vm0, %v180_v33 }
  0xe7   :  { %192 = vst.msk [vmem:[#allocation2 + $0x38] sm:$0xff] %vm18_vm0, %v184_v34  ;;  %187 = vst.msk [vmem:[#allocation2 + $0x10] sm:$0xff] %vm18_vm0, %v179_v37 }
  0xe8   :  { %191 = vst.msk [vmem:[#allocation2 + $0x30] sm:$0xff] %vm18_vm0, %v183_v38 }
  0xe9   :  { %v197_v40 = vld [vmem:[#allocation2 + $0x8] sm:$0xff] }
  0xea   :  { %v201_v41 = vld [vmem:[#allocation2 + $0x28] sm:$0xff]  ;;  %v212_v42 = vadd.f32 %v239_v39, %v197_v40  ;;  %v196_v44 = vld [vmem:[#allocation2] sm:$0xff] }
  0xeb   :  { %v216_v43 = vadd.f32 %v239_v39, %v201_v41  ;;  %v200_v45 = vld [vmem:[#allocation2 + $0x20] sm:$0xff]  ;;  %v211_v46 = vadd.f32 %v239_v39, %v196_v44 }
  0xec   :  { %v215_v47 = vadd.f32 %v239_v39, %v200_v45  ;;  %220 = vst.msk [vmem:[%s404_s3 + $0x8] sm:$0xff] %vm18_vm0, %v212_v42 }
  0xed   :  { %224 = vst.msk [vmem:[%s404_s3 + $0x28] sm:$0xff] %vm18_vm0, %v216_v43  ;;  %219 = vst.msk [vmem:[%s404_s3] sm:$0xff] %vm18_vm0, %v211_v46  ;;  %v199_v48 = vld [vmem:[#allocation2 + $0x18] sm:$0xff] }
  0xee   :  { %223 = vst.msk [vmem:[%s404_s3 + $0x20] sm:$0xff] %vm18_vm0, %v215_v47  ;;  %v203_v49 = vld [vmem:[#allocation2 + $0x38] sm:$0xff]  ;;  %v214_v50 = vadd.f32 %v239_v39, %v199_v48  ;;  %v198_v52 = vld [vmem:[#allocation2 + $0x10] sm:$0xff] }
  0xef   :  { %v218_v51 = vadd.f32 %v239_v39, %v203_v49  ;;  %v202_v53 = vld [vmem:[#allocation2 + $0x30] sm:$0xff]  ;;  %v213_v54 = vadd.f32 %v239_v39, %v198_v52 }
  0xf0   :  { %v217_v55 = vadd.f32 %v239_v39, %v202_v53  ;;  %222 = vst.msk [vmem:[%s404_s3 + $0x18] sm:$0xff] %vm18_vm0, %v214_v50 }
  0xf1   :  { %226 = vst.msk [vmem:[%s404_s3 + $0x38] sm:$0xff] %vm18_vm0, %v218_v51  ;;  %221 = vst.msk [vmem:[%s404_s3 + $0x10] sm:$0xff] %vm18_vm0, %v213_v54 }
  0xf2   :  { %225 = vst.msk [vmem:[%s404_s3 + $0x30] sm:$0xff] %vm18_vm0, %v217_v55 }

</bundles_post_ra>
